<compile_context>
chip_gen: v5e
topology: v5e:2x2
jax: 0.10.0
libtpu: 0.0.40
codegen_flags: <defaults>
</compile_context>

<pallas_src>
import jax
import jax.numpy as jnp
from jax.experimental import pallas as pl
from jax.experimental.pallas import tpu as pltpu

EPS = 1e-5            # PyTorch nn.LayerNorm default
LANES = 128           # TPU lane width (last vreg dim)
MAX_BLOCK_ROWS = 2048  # 2048 * 128 tokens per grid step (~3 MiB HBM traffic/step,
                       # ~6 MiB double-buffered VMEM -> fits v5e/v6e/v7x defaults)


# ----------------------------- model math ---------------------------------

def _layernorm(h, gamma, beta):
    mean = jnp.mean(h, axis=-1, keepdims=True)
    var = jnp.mean((h - mean) ** 2, axis=-1, keepdims=True)
    return (h - mean) * jax.lax.rsqrt(var + EPS) * gamma + beta


def _collapse_to_table(params):
    """Run the exact forward on the only 2 possible token ids -> (2, 2) table."""
    h = params["emb"]                                  # rows = embedding of [0, 1]
    h = h @ params["w1"].T + params["b1"]
    h = _layernorm(h, params["g1"], params["be1"])
    h = h @ params["w2"].T + params["b2"]
    h = _layernorm(h, params["g2"], params["be2"])
    return h @ params["w3"].T + params["b3"]           # (2, 2): [token_id, feature]


# ------------------------------ kernel -------------------------------------

def _select_kernel(tbl_ref, x_ref, o_ref):
    # tbl_ref: (2, 2) f32 in SMEM        (whole collapsed network: 4 scalars)
    # x_ref  : (TR, 128) int32 token ids (lane- and sublane-dense)
    # o_ref  : (2, TR, 128) f32          (feature-major, lane-dense output)
    sel = x_ref[...] == 0                               # VPU compare, full vregs
    t00 = tbl_ref[0, 0]
    t01 = tbl_ref[0, 1]
    t10 = tbl_ref[1, 0]
    t11 = tbl_ref[1, 1]
    o_ref[0] = jnp.where(sel, t00, t10)                 # feature 0 for all tokens
    o_ref[1] = jnp.where(sel, t01, t11)                 # feature 1 for all tokens


# ------------------------------ wrapper -------------------------------------

def simple_model_forward(x_ids, params):
    """x_ids: (batch, seq) int32 in {0,1}  ->  (batch, seq, 2) float32."""
    batch, seq = x_ids.shape
    n = batch * seq

    # Collapse the whole network to a 2-entry lookup table (exact, plain JAX).
    table = _collapse_to_table(params).astype(jnp.float32)          # (2, 2)

    # Lane-major token layout: pad to whole 128-lane rows; tile rows for the grid.
    rows = -(-n // LANES)                    # cdiv
    if rows <= MAX_BLOCK_ROWS:
        block_rows = rows                    # single full-extent block (exempt
                                             # from the (8,128) divisibility rule)
    else:
        block_rows = MAX_BLOCK_ROWS          # multiple of 8 -> valid sublane tile
        rows = block_rows * (-(-rows // block_rows))
    n_pad = rows * LANES

    x_flat = x_ids.reshape(-1).astype(jnp.int32)
    x_flat = jnp.pad(x_flat, (0, n_pad - n))
    x2d = x_flat.reshape(rows, LANES)

    grid = (rows // block_rows,)

    out = pl.pallas_call(
        _select_kernel,
        out_shape=jax.ShapeDtypeStruct((2, rows, LANES), jnp.float32),
        grid=grid,
        in_specs=[
            pl.BlockSpec(memory_space=pltpu.MemorySpace.SMEM),      # (2,2) table
            pl.BlockSpec((block_rows, LANES), lambda i: (i, 0)),    # token ids
        ],
        out_specs=pl.BlockSpec((2, block_rows, LANES), lambda i: (0, i, 0)),
        compiler_params=pltpu.CompilerParams(
            dimension_semantics=("parallel",)),                     # megacore on v7x
    )(table, x2d)

    out = out.reshape(2, n_pad)[:, :n]       # (2, N) feature-major, drop padding
    return out.T.reshape(batch, seq, 2)


# --------------------------- params & reference -----------------------------

def init_params(key):
    """Deterministic init matching PyTorch shapes/init style (not bitwise)."""
    k = jax.random.split(key, 7)

    def linear(kw, kb, fan_in, fan_out):
        bound = 1.0 / jnp.sqrt(float(fan_in))
        w = jax.random.uniform(kw, (fan_out, fan_in), jnp.float32, -bound, bound)
        b = jax.random.uniform(kb, (fan_out,), jnp.float32, -bound, bound)
        return w, b

    emb = jax.random.normal(k[0], (2, 2), jnp.float32)   # nn.Embedding ~ N(0,1)
    w1, b1 = linear(k[1], k[2], 2, 4)
    w2, b2 = linear(k[3], k[4], 4, 2)
    w3, b3 = linear(k[5], k[6], 2, 2)
    g1, be1 = jnp.ones((4,), jnp.float32), jnp.zeros((4,), jnp.float32)
    g2, be2 = jnp.ones((2,), jnp.float32), jnp.zeros((2,), jnp.float32)
    return dict(emb=emb, w1=w1, b1=b1, g1=g1, be1=be1,
                w2=w2, b2=b2, g2=g2, be2=be2, w3=w3, b3=b3)


def reference_forward(x_ids, params):
    """Plain-JAX reference of the PyTorch forward (per-token layer chain)."""
    h = params["emb"][x_ids]
    h = h @ params["w1"].T + params["b1"]
    h = _layernorm(h, params["g1"], params["be1"])
    h = h @ params["w2"].T + params["b2"]
    h = _layernorm(h, params["g2"], params["be2"])
    return h @ params["w3"].T + params["b3"]


# ------------------------------- main ---------------------------------------

if __name__ == "__main__":
    key = jax.random.PRNGKey(0)
    k_x, k_p = jax.random.split(key)

    batch, seq = 2, 8
    x_ids = jax.random.randint(k_x, (batch, seq), 0, 2, dtype=jnp.int32)
    params = init_params(k_p)

    out = simple_model_forward(x_ids, params)
    out = jax.block_until_ready(out)

    ref = reference_forward(x_ids, params)
    assert out.shape == (batch, seq, 2), out.shape
    assert jnp.allclose(out, ref, atol=1e-5, rtol=1e-5), (
        f"max abs err {jnp.max(jnp.abs(out - ref))}")

    print("KERNEL_OK")
</pallas_src>

<mosaic_0001>
module attributes {stable_mosaic.version = 11 : i64} {
  func.func @_select_kernel(%arg0: i32, %arg1: memref<2x2xf32, #tpu.memory_space<smem>>, %arg2: memref<1x128xi32, #tpu.memory_space<vmem>>, %arg3: memref<2x1x128xf32, #tpu.memory_space<vmem>>) attributes {dimension_semantics = [#tpu.dimension_semantics<parallel>], iteration_bounds = array<i64: 1>, scalar_prefetch = 0 : i64, scratch_operands = 0 : i64, tpu.core_type = #tpu.core_type<tc>, window_params = [{transform_indices = @transform_0, window_bounds = array<i64: 2, 2>}, {transform_indices = @transform_1, window_bounds = array<i64: 1, 128>}, {transform_indices = @transform_2, window_bounds = array<i64: 2, 1, 128>}]} {
    %c0 = arith.constant 0 : index
    %c0_0 = arith.constant 0 : index
    %0 = vector.load %arg2[%c0, %c0_0] : memref<1x128xi32, #tpu.memory_space<vmem>>, vector<1x128xi32>
    %c0_i32 = arith.constant 0 : i32
    %1 = vector.broadcast %c0_i32 : i32 to vector<1x128xi32>
    %2 = arith.cmpi eq, %0, %1 : vector<1x128xi32>
    %c0_1 = arith.constant 0 : index
    %c0_2 = arith.constant 0 : index
    %3 = memref.load %arg1[%c0_1, %c0_2] : memref<2x2xf32, #tpu.memory_space<smem>>
    %c0_3 = arith.constant 0 : index
    %c1 = arith.constant 1 : index
    %4 = memref.load %arg1[%c0_3, %c1] : memref<2x2xf32, #tpu.memory_space<smem>>
    %c1_4 = arith.constant 1 : index
    %c0_5 = arith.constant 0 : index
    %5 = memref.load %arg1[%c1_4, %c0_5] : memref<2x2xf32, #tpu.memory_space<smem>>
    %c1_6 = arith.constant 1 : index
    %c1_7 = arith.constant 1 : index
    %6 = memref.load %arg1[%c1_6, %c1_7] : memref<2x2xf32, #tpu.memory_space<smem>>
    %7 = vector.broadcast %3 : f32 to vector<1x128xf32>
    %8 = vector.broadcast %5 : f32 to vector<1x128xf32>
    %9 = arith.select %2, %7, %8 : vector<1x128xi1>, vector<1x128xf32>
    %c0_8 = arith.constant 0 : index
    %c0_9 = arith.constant 0 : index
    %c0_10 = arith.constant 0 : index
    %10 = vector.load %arg3[%c0_8, %c0_9, %c0_10] : memref<2x1x128xf32, #tpu.memory_space<vmem>>, vector<1x1x128xf32>
    %11 = vector.shape_cast %10 : vector<1x1x128xf32> to vector<1x128xf32>
    %12 = vector.shape_cast %9 : vector<1x128xf32> to vector<1x1x128xf32>
    tpu.vector_store %arg3[%c0_8, %c0_9, %c0_10], %12 {strides = array<i32>} : memref<2x1x128xf32, #tpu.memory_space<vmem>>, vector<1x1x128xf32>,
    %13 = vector.broadcast %4 : f32 to vector<1x128xf32>
    %14 = vector.broadcast %6 : f32 to vector<1x128xf32>
    %15 = arith.select %2, %13, %14 : vector<1x128xi1>, vector<1x128xf32>
    %c1_11 = arith.constant 1 : index
    %c0_12 = arith.constant 0 : index
    %c0_13 = arith.constant 0 : index
    %16 = vector.load %arg3[%c1_11, %c0_12, %c0_13] : memref<2x1x128xf32, #tpu.memory_space<vmem>>, vector<1x1x128xf32>
    %17 = vector.shape_cast %16 : vector<1x1x128xf32> to vector<1x128xf32>
    %18 = vector.shape_cast %15 : vector<1x128xf32> to vector<1x1x128xf32>
    tpu.vector_store %arg3[%c1_11, %c0_12, %c0_13], %18 {strides = array<i32>} : memref<2x1x128xf32, #tpu.memory_space<vmem>>, vector<1x1x128xf32>,
    return
  }
  func.func @transform_0(%arg0: i32) -> (i32, i32) {
    %c0_i32 = arith.constant 0 : i32
    %c0_i32_0 = arith.constant 0 : i32
    %c0_i32_1 = arith.constant 0 : i32
    return %c0_i32, %c0_i32_0 : i32, i32
  }
  func.func @transform_1(%arg0: i32) -> (i32, i32) {
    %c0_i32 = arith.constant 0 : i32
    %c0_i32_0 = arith.constant 0 : i32
    return %arg0, %c0_i32 : i32, i32
  }
  func.func @transform_2(%arg0: i32) -> (i32, i32, i32) {
    %c0_i32 = arith.constant 0 : i32
    %c0_i32_0 = arith.constant 0 : i32
    %c0_i32_1 = arith.constant 0 : i32
    return %c0_i32, %arg0, %c0_i32_0 : i32, i32, i32
  }
}

</mosaic_0001>

<bundles_post_ra>
// kernel: tpu_custom_call.1
= control target key start
LH: loop header
LB: loop body
LE: loop exit
PB: predicated region body
PF: predicated region fallthrough
CT: control target
= control target key end

     0   :  { %7 = vsyncpa [#allocation5], 0  ;;  %s177_s0 = inlined_call_operand.hbm [shape: f32[2,2], index: 0, kind: input, shape index: {}]   ;;  %s178_s1 = inlined_call_operand.hbm [shape: s32[1,128], index: 1, kind: input, shape index: {}]   ;;  %s179_s2 = inlined_call_operand.hbm [shape: f32[2,1,128], index: 2, kind: output, shape index: {}]  }
   0x1   :  { %8 = vsyncpa [#allocation3], 0 }
   0x2   :  { %9 = vsyncpa [#allocation4], 0  ;;  %s15_s11 = sshll.u32 %s177_s0, 4  ;;  %s24_s14 = sshll.u32 %s178_s1, 4  ;;  %s16_s11 = int_to_ptr.hbm [resolvable:$true] %s15_s11  ;;  %s25_s14 = int_to_ptr.hbm [resolvable:$true] %s24_s14 }
   0x3   :  { %s148_s15 = smov [#allocation2]   ;;  %s149_s16 = smov [#allocation6]  }
   0x4   :  { %18 = dma.hbm_to_smem %s16_s11, 32, %s148_s15, [#allocation5]  }
   0x5   :  { %s26_s17 = sshll.u32 %s149_s16, 4  ;;  %s27_s17 = int_to_ptr.vmem [resolvable:$true] %s26_s17 }
   0x6   :  { %29 = dma.hbm_to_vmem [thread:$0]  %s25_s14, 16, %s27_s17, [#allocation3]  }
   0x7   :  { %142 = dma.done.wait [#allocation5], 32  }
   0x8   :  { %143 = vsyncadd [#allocation5], 4294967264 }
   0x9   :  { %144 = dma.done.wait [#allocation3], 16  }
   0xa   :  { %145 = vsyncadd [#allocation3], 4294967280 }
   0xb   :  { %38 = sfence }
   0xc   :  { %s41_s18 = sld [smem:[#allocation2]]  ;;  %v39_v0 = vld [vmem:[#allocation6] sm:$0x1]  ;;  %s150_s21 = smov [#allocation7]  }
   0xd   :  { %s75_s19 = sld [smem:[#allocation2 + $0x80]]  ;;  %vm40_vm0 = vcmp.eq.s32.totalorder %v39_v0, 0  ;;  %s58_s1 = sshll.u32 %s150_s21, 4  ;;  %s59_s1 = int_to_ptr.vmem [resolvable:$true] %s58_s1 }
   0xe   :  { %s74_s0 = sld [smem:[#allocation2 + $0x1]]  ;;  %s60_s24 = sshll.u32 %s179_s2, 4  ;;  %s61_s24 = int_to_ptr.hbm [resolvable:$true] %s60_s24 }
   0xf   :  { %s76_s20 = sld [smem:[#allocation2 + $0x81]]  ;;  %s151_s25 = smov 16  }
  0x10   :  { %s152_s26 = smov 1  }
  0x12   :  { %v45_v1 = vstv %s41_s18 }
  0x13   :  { %v46_v2 = vstv %s75_s19 }
  0x14   :  { %v47_v3 = vsel %vm40_vm0, %v45_v1, %v46_v2  ;;  %v49_v4 = vstv %s74_s0 }
  0x15   :  { %48 = vst [vmem:[#allocation7] sm:$0x1] %v47_v3  ;;  %v50_v5 = vstv %s76_s20 }
  0x16   :  { %v51_v6 = vsel %vm40_vm0, %v49_v4, %v50_v5 }
  0x17   :  { %53 = vst [vmem:[#allocation7 + $0x1] sm:$0x1] %v51_v6 }
  0x18   :  { %66 = dma.vmem_to_hbm [thread:$0]  %s59_s1, 32, %s61_s24, [#allocation4], %s151_s25, %s151_s25, %s152_s26  }
  0x19   :  { %146 = dma.done.wait [#allocation4], 32  }
  0x1a   :  { %147 = vsyncadd [#allocation4], 4294967264 }
  0x1b   :  { %71 = vsyncpa [#allocation3], 1 }
  0x1c   :  { %72 = vsyncpa [#allocation4], 1 }
  0x1d   :  { %73 = vsyncpa [#allocation5], 1 }

</bundles_post_ra>
